<compile_context>
chip_gen: v7x
topology: tpu7x:2x2x1
jax: 0.10.0
libtpu: 0.0.40
codegen_flags: <defaults>
</compile_context>

<pallas_src>
import functools

import jax
import jax.numpy as jnp
from jax.experimental import pallas as pl
from jax.experimental.pallas import tpu as pltpu


def _ce_tile_kernel(logits_ref, labels_ref, out_ref, m_ref, l_ref, t_ref, *,
                    ignore_index, n_rows, n_vocab, r_tile, v_tile):
    """Streaming cross-entropy over one (r_tile, v_tile) logits tile.

    grid = (num_row_tiles, num_vocab_tiles); vocab axis innermost ("arbitrary"),
    row axis "parallel".  m/l/t scratch hold the per-row running max, exp-sum
    and target-logit accumulators (fp32), resident across the vocab axis.
    """
    row_blk = pl.program_id(0)
    vocab_blk = pl.program_id(1)
    num_vocab_tiles = pl.num_programs(1)

    @pl.when(vocab_blk == 0)
    def _init():
        m_ref[...] = jnp.full_like(m_ref, -jnp.inf)
        l_ref[...] = jnp.zeros_like(l_ref)
        t_ref[...] = jnp.zeros_like(t_ref)

    labels = labels_ref[...]                                # (r_tile, 1) int32
    # Shift the label into tile-local coordinates instead of adding the tile
    # offset to a full (r_tile, v_tile) iota: saves one VALU add per element.
    local_label = labels - vocab_blk * v_tile               # (r_tile, 1)
    lane = jax.lax.broadcasted_iota(jnp.int32, (r_tile, v_tile), 1)

    def update(valid_cols):
        # Keep logits in their input dtype (e.g. bf16) for the max and the
        # one-hot target extraction: both are exact (max of bf16 values; sum of
        # at most one nonzero) and run at packed VALU rate on v6e/v7x.
        x = logits_ref[...]                                  # (r_tile, v_tile)
        if valid_cols is not None:
            # Ragged last vocab tile: padded columns must not contribute.
            x = jnp.where(lane < valid_cols, x, jnp.array(-jnp.inf, x.dtype))

        # Target logit, fused into the same streaming pass.  ignore_index (<0)
        # and out-of-tile labels never match the local lane index.
        hit = lane == local_label
        t_ref[...] += jnp.sum(jnp.where(hit, x, jnp.zeros_like(x)),
                              axis=-1, keepdims=True).astype(jnp.float32)

        # Online logsumexp.  The fp32 upcast of the tile lives only on the exp
        # path (single use) — max is computed in the input dtype (exact).
        tile_max = jnp.max(x, axis=-1, keepdims=True).astype(jnp.float32)
        m_prev = m_ref[...]
        m_new = jnp.maximum(m_prev, tile_max)
        l_ref[...] = l_ref[...] * jnp.exp(m_prev - m_new) + jnp.sum(
            jnp.exp(x.astype(jnp.float32) - m_new), axis=-1, keepdims=True)
        m_ref[...] = m_new

    if n_vocab % v_tile != 0:
        # Gate the ragged-vocab mask so the compare+select only executes on the
        # final vocab tile (pl.when), not on every tile of the chunk.
        last = num_vocab_tiles - 1

        @pl.when(vocab_blk != last)
        def _full_tile():
            update(None)

        @pl.when(vocab_blk == last)
        def _ragged_tile():
            update(n_vocab % v_tile)
    else:
        update(None)

    @pl.when(vocab_blk == num_vocab_tiles - 1)
    def _finalize():
        lse = m_ref[...] + jnp.log(l_ref[...])               # (r_tile, 1) f32
        valid = labels != ignore_index
        if n_rows % r_tile != 0:
            # Ragged last row tile: rows past n_rows hold garbage -> mask out.
            row = jax.lax.broadcasted_iota(jnp.int32, (r_tile, 1), 0) \
                + row_blk * r_tile
            valid = jnp.logical_and(valid, row < n_rows)
        per_row = jnp.where(valid, lse - t_ref[...], 0.0)
        partial = jnp.sum(per_row)                           # scalar f32
        # Lane-dense output block: scalar in lane 0, zeros elsewhere.
        sub = jax.lax.broadcasted_iota(jnp.int32, (1, 8, 128), 1)
        ln = jax.lax.broadcasted_iota(jnp.int32, (1, 8, 128), 2)
        out_ref[...] = jnp.where((sub == 0) & (ln == 0), partial, 0.0)


def _round_down(x, m):
    return max(m, (x // m) * m)


def _chunk_loss_sum(logits_2d, labels_2d, *, ignore_index, r_tile, v_tile,
                    vmem_limit_bytes=None):
    """Sum-reduced CE of one chunk: logits_2d (R, V), labels_2d (R, 1)."""
    R, V = logits_2d.shape
    # A block dim equal to the full array dim is always legal; otherwise keep
    # (8, 128) divisibility on the last two dims.
    rblk = R if R <= r_tile else _round_down(r_tile, 8)
    vblk = V if V <= v_tile else _round_down(v_tile, 128)
    num_row_tiles = pl.cdiv(R, rblk)
    num_vocab_tiles = pl.cdiv(V, vblk)

    if vmem_limit_bytes is None:
        # Double-buffered input tile + headroom for the fused f32 exp stream.
        # 256x8192 bf16 -> 8 MiB dbl-buffered, fits the 32 MiB scoped default
        # on v6e/v7x; v5e's 16 MiB default is explicitly raised here.
        tile_in = rblk * vblk * logits_2d.dtype.itemsize
        tile_f32 = rblk * vblk * 4
        vmem_limit_bytes = max(32 << 20,
                               min(2 * tile_in + 2 * tile_f32 + (4 << 20),
                                   96 << 20))

    kernel = functools.partial(
        _ce_tile_kernel, ignore_index=ignore_index,
        n_rows=R, n_vocab=V, r_tile=rblk, v_tile=vblk)

    itemsize = logits_2d.dtype.itemsize
    cost = pl.CostEstimate(
        flops=6 * R * V,
        transcendentals=R * V,
        bytes_accessed=R * V * itemsize + R * 4 + num_row_tiles * 8 * 128 * 4)

    partials = pl.pallas_call(
        kernel,
        out_shape=jax.ShapeDtypeStruct((num_row_tiles, 8, 128), jnp.float32),
        grid_spec=pltpu.PrefetchScalarGridSpec(
            num_scalar_prefetch=0,
            grid=(num_row_tiles, num_vocab_tiles),
            in_specs=[
                # Logits tile (default double buffer; Buffered(3) only if a
                # profile shows exposed DMA — it would pressure v7x/v5e VMEM).
                pl.BlockSpec((rblk, vblk), lambda r, v: (r, v)),
                # Labels: same row block for all vocab tiles -> stays resident.
                pl.BlockSpec((rblk, 1), lambda r, v: (r, 0)),
            ],
            out_specs=pl.BlockSpec((1, 8, 128), lambda r, v: (r, 0, 0)),
            scratch_shapes=[pltpu.VMEM((rblk, 1), jnp.float32)
                            for _ in range(3)],
        ),
        compiler_params=pltpu.CompilerParams(
            # TODO(synk): on v7x consider pltpu.CORE_PARALLEL on the row axis
            # (and R >= 2*rblk per chunk) to guarantee both TensorCores engage.
            dimension_semantics=("parallel", "arbitrary"),
            vmem_limit_bytes=int(vmem_limit_bytes)),
        cost_estimate=cost,
    )(logits_2d, labels_2d)

    return jnp.sum(partials)


def chunked_ce_loss(logits_chunks, labels, ignore_index=-100,
                    r_tile=256, v_tile=8192, vmem_limit_bytes=None):
    """JAX/Pallas equivalent of CEWithChunkedOutputLoss.forward.

    logits_chunks: list of (B, T // num_chunks, V) arrays (e.g. bf16)
    labels:        (B, T) integer array
    """
    num_chunks = len(logits_chunks)
    total_elements = jnp.sum(labels != ignore_index).astype(jnp.float32)
    # TODO(synk): torchtune's tensor_split tolerates T % num_chunks != 0; we
    # assume even chunking, as produced by model.set_num_output_chunks().
    label_chunks = jnp.split(labels, num_chunks, axis=1)

    # TODO(synk): folding the per-chunk loop into a single pallas_call (chunk
    # grid axis) needs one contiguous logits buffer; with a list of separate
    # HBM arrays we keep one streaming call per chunk.
    total_loss = jnp.float32(0.0)
    for logit_chunk, label_chunk in zip(logits_chunks, label_chunks):
        V = logit_chunk.shape[-1]
        R = logit_chunk.shape[0] * logit_chunk.shape[1]
        logits_2d = logit_chunk.reshape(R, V)      # contiguous reshape: free
        labels_2d = label_chunk.reshape(R, 1).astype(jnp.int32)
        total_loss = total_loss + _chunk_loss_sum(
            logits_2d, labels_2d, ignore_index=ignore_index,
            r_tile=r_tile, v_tile=v_tile, vmem_limit_bytes=vmem_limit_bytes)

    # Matches the reference: all-ignored labels give 0/0 = NaN, like PyTorch.
    return total_loss / total_elements


def _reference_loss(logits_chunks, labels, ignore_index=-100):
    """Plain-JAX reference of the PyTorch module's forward."""
    V = logits_chunks[0].shape[-1]
    logits = jnp.concatenate(logits_chunks, axis=1).astype(jnp.float32)
    flat_logits = logits.reshape(-1, V)
    flat_labels = labels.reshape(-1)
    valid = flat_labels != ignore_index
    logz = jax.scipy.special.logsumexp(flat_logits, axis=-1)
    tgt = jnp.take_along_axis(
        flat_logits, jnp.clip(flat_labels, 0, V - 1)[:, None], axis=-1)[:, 0]
    per_tok = jnp.where(valid, logz - tgt, 0.0)
    return jnp.sum(per_tok) / jnp.sum(valid)


if __name__ == "__main__":
    IGNORE = -100

    def run_case(B, T, V, num_chunks, r_tile, v_tile, key):
        k_logits, k_labels, k_mask = jax.random.split(key, 3)
        logits_full = jax.random.normal(
            k_logits, (B, T, V), dtype=jnp.float32).astype(jnp.bfloat16)
        labels = jax.random.randint(k_labels, (B, T), 0, V, dtype=jnp.int32)
        ignore_mask = jax.random.bernoulli(k_mask, p=0.25, shape=(B, T))
        labels = jnp.where(ignore_mask, IGNORE, labels)

        Tc = T // num_chunks
        logits_chunks = [
            logits_full[:, i * Tc:(i + 1) * Tc, :] for i in range(num_chunks)
        ]

        loss_fn = jax.jit(functools.partial(
            chunked_ce_loss, ignore_index=IGNORE,
            r_tile=r_tile, v_tile=v_tile))
        loss = jax.block_until_ready(loss_fn(logits_chunks, labels))
        ref = _reference_loss(logits_chunks, labels, ignore_index=IGNORE)
        assert jnp.allclose(loss, ref, rtol=1e-3, atol=1e-3), (loss, ref)
        return loss

    key = jax.random.PRNGKey(0)
    k1, k2, k3 = jax.random.split(key, 3)

    # Case 1: default (large) tiles; each chunk fits in a single tile.
    run_case(B=2, T=32, V=256, num_chunks=8, r_tile=256, v_tile=8192, key=k1)

    # Case 2: forced-small tiles; streaming logsumexp across multiple vocab
    # tiles plus ragged-row masking and the pl.when-gated ragged-vocab tile.
    run_case(B=2, T=12, V=200, num_chunks=2, r_tile=8, v_tile=128, key=k2)

    # Case 3: multiple full vocab tiles (no ragged path), single row tile.
    run_case(B=1, T=16, V=384, num_chunks=2, r_tile=8, v_tile=128, key=k3)

    print("KERNEL_OK")
</pallas_src>

<mosaic_0001>
module attributes {stable_mosaic.version = 11 : i64} {
  func.func @_ce_tile_kernel(%arg0: i32, %arg1: i32, %arg2: memref<8x256xbf16, #tpu.memory_space<vmem>>, %arg3: memref<8x1xi32, #tpu.memory_space<vmem>>, %arg4: memref<1x8x128xf32, #tpu.memory_space<vmem>>, %arg5: memref<8x1xf32, #tpu.memory_space<vmem>>, %arg6: memref<8x1xf32, #tpu.memory_space<vmem>>, %arg7: memref<8x1xf32, #tpu.memory_space<vmem>>) attributes {dimension_semantics = [#tpu.dimension_semantics<parallel>, #tpu.dimension_semantics<arbitrary>], iteration_bounds = array<i64: 1, 1>, scalar_prefetch = 0 : i64, scratch_operands = 3 : i64, tpu.core_type = #tpu.core_type<tc>, window_params = [{transform_indices = @transform_0, window_bounds = array<i64: 8, 256>}, {transform_indices = @transform_1, window_bounds = array<i64: 8, 1>}, {transform_indices = @transform_2, window_bounds = array<i64: 1, 8, 128>}]} {
    %c0_i32 = arith.constant 0 : i32
    %0 = arith.cmpi eq, %arg1, %c0_i32 : i32
    %1 = arith.extui %0 : i1 to i32
    %c0_i32_0 = arith.constant 0 : i32
    %2 = arith.cmpi ne, %1, %c0_i32_0 : i32
    scf.if %2 {
      %cst_21 = arith.constant 0xFF800000 : f32
      %42 = vector.broadcast %cst_21 : f32 to vector<8x1xf32>
      %c0_22 = arith.constant 0 : index
      %c0_23 = arith.constant 0 : index
      %43 = vector.load %arg5[%c0_22, %c0_23] : memref<8x1xf32, #tpu.memory_space<vmem>>, vector<8x1xf32>
      tpu.vector_store %arg5[%c0_22, %c0_23], %42 {strides = array<i32>} : memref<8x1xf32, #tpu.memory_space<vmem>>, vector<8x1xf32>,
      %cst_24 = arith.constant 0.000000e+00 : f32
      %44 = vector.broadcast %cst_24 : f32 to vector<8x1xf32>
      %c0_25 = arith.constant 0 : index
      %c0_26 = arith.constant 0 : index
      %45 = vector.load %arg6[%c0_25, %c0_26] : memref<8x1xf32, #tpu.memory_space<vmem>>, vector<8x1xf32>
      tpu.vector_store %arg6[%c0_25, %c0_26], %44 {strides = array<i32>} : memref<8x1xf32, #tpu.memory_space<vmem>>, vector<8x1xf32>,
      %cst_27 = arith.constant 0.000000e+00 : f32
      %46 = vector.broadcast %cst_27 : f32 to vector<8x1xf32>
      %c0_28 = arith.constant 0 : index
      %c0_29 = arith.constant 0 : index
      %47 = vector.load %arg7[%c0_28, %c0_29] : memref<8x1xf32, #tpu.memory_space<vmem>>, vector<8x1xf32>
      tpu.vector_store %arg7[%c0_28, %c0_29], %46 {strides = array<i32>} : memref<8x1xf32, #tpu.memory_space<vmem>>, vector<8x1xf32>,
    } else {
    }
    %c0 = arith.constant 0 : index
    %c0_1 = arith.constant 0 : index
    %3 = vector.load %arg3[%c0, %c0_1] : memref<8x1xi32, #tpu.memory_space<vmem>>, vector<8x1xi32>
    %c256_i32 = arith.constant 256 : i32
    %4 = arith.muli %arg1, %c256_i32 : i32
    %5 = vector.broadcast %4 : i32 to vector<8x1xi32>
    %6 = arith.subi %3, %5 : vector<8x1xi32>
    %7 = tpu.iota {dimensions = array<i32: 1>} : vector<8x256xi32>
    %c0_2 = arith.constant 0 : index
    %c0_3 = arith.constant 0 : index
    %8 = vector.load %arg2[%c0_2, %c0_3] : memref<8x256xbf16, #tpu.memory_space<vmem>>, vector<8x256xbf16>
    %9 = vector.broadcast %6 : vector<8x1xi32> to vector<8x256xi32>
    %10 = arith.cmpi eq, %7, %9 : vector<8x256xi32>
    %c0_4 = arith.constant 0 : index
    %c0_5 = arith.constant 0 : index
    %11 = vector.load %arg7[%c0_4, %c0_5] : memref<8x1xf32, #tpu.memory_space<vmem>>, vector<8x1xf32>
    %cst = arith.constant 0.000000e+00 : bf16
    %12 = vector.broadcast %cst : bf16 to vector<8x256xbf16>
    %13 = arith.select %10, %8, %12 : vector<8x256xi1>, vector<8x256xbf16>
    %14 = arith.extf %13 : vector<8x256xbf16> to vector<8x256xf32>
    %cst_6 = arith.constant dense<0.000000e+00> : vector<8xf32>
    %15 = vector.multi_reduction <add>, %14, %cst_6 [1] : vector<8x256xf32> to vector<8xf32>
    %16 = vector.shape_cast %15 : vector<8xf32> to vector<8x1xf32>
    %17 = arith.truncf %16 : vector<8x1xf32> to vector<8x1xbf16>
    %18 = arith.extf %17 : vector<8x1xbf16> to vector<8x1xf32>
    %19 = arith.addf %11, %18 : vector<8x1xf32>
    %c0_7 = arith.constant 0 : index
    %c0_8 = arith.constant 0 : index
    %20 = vector.load %arg7[%c0_7, %c0_8] : memref<8x1xf32, #tpu.memory_space<vmem>>, vector<8x1xf32>
    tpu.vector_store %arg7[%c0_7, %c0_8], %19 {strides = array<i32>} : memref<8x1xf32, #tpu.memory_space<vmem>>, vector<8x1xf32>,
    %cst_9 = arith.constant dense<0xFF80> : vector<8xbf16>
    %21 = vector.multi_reduction <maximumf>, %8, %cst_9 [1] : vector<8x256xbf16> to vector<8xbf16>
    %22 = vector.shape_cast %21 : vector<8xbf16> to vector<8x1xbf16>
    %23 = arith.extf %22 : vector<8x1xbf16> to vector<8x1xf32>
    %c0_10 = arith.constant 0 : index
    %c0_11 = arith.constant 0 : index
    %24 = vector.load %arg5[%c0_10, %c0_11] : memref<8x1xf32, #tpu.memory_space<vmem>>, vector<8x1xf32>
    %25 = arith.maximumf %24, %23 : vector<8x1xf32>
    %c0_12 = arith.constant 0 : index
    %c0_13 = arith.constant 0 : index
    %26 = vector.load %arg6[%c0_12, %c0_13] : memref<8x1xf32, #tpu.memory_space<vmem>>, vector<8x1xf32>
    %27 = arith.subf %24, %25 : vector<8x1xf32>
    %28 = math.exp %27 : vector<8x1xf32>
    %29 = arith.mulf %26, %28 : vector<8x1xf32>
    %30 = arith.extf %8 : vector<8x256xbf16> to vector<8x256xf32>
    %31 = vector.broadcast %25 : vector<8x1xf32> to vector<8x256xf32>
    %32 = arith.subf %30, %31 : vector<8x256xf32>
    %33 = math.exp %32 : vector<8x256xf32>
    %cst_14 = arith.constant dense<0.000000e+00> : vector<8xf32>
    %34 = vector.multi_reduction <add>, %33, %cst_14 [1] : vector<8x256xf32> to vector<8xf32>
    %35 = vector.shape_cast %34 : vector<8xf32> to vector<8x1xf32>
    %36 = arith.addf %29, %35 : vector<8x1xf32>
    %c0_15 = arith.constant 0 : index
    %c0_16 = arith.constant 0 : index
    %37 = vector.load %arg6[%c0_15, %c0_16] : memref<8x1xf32, #tpu.memory_space<vmem>>, vector<8x1xf32>
    tpu.vector_store %arg6[%c0_15, %c0_16], %36 {strides = array<i32>} : memref<8x1xf32, #tpu.memory_space<vmem>>, vector<8x1xf32>,
    %c0_17 = arith.constant 0 : index
    %c0_18 = arith.constant 0 : index
    %38 = vector.load %arg5[%c0_17, %c0_18] : memref<8x1xf32, #tpu.memory_space<vmem>>, vector<8x1xf32>
    tpu.vector_store %arg5[%c0_17, %c0_18], %25 {strides = array<i32>} : memref<8x1xf32, #tpu.memory_space<vmem>>, vector<8x1xf32>,
    %c0_i32_19 = arith.constant 0 : i32
    %39 = arith.cmpi eq, %arg1, %c0_i32_19 : i32
    %40 = arith.extui %39 : i1 to i32
    %c0_i32_20 = arith.constant 0 : i32
    %41 = arith.cmpi ne, %40, %c0_i32_20 : i32
    scf.if %41 {
      %c0_21 = arith.constant 0 : index
      %c0_22 = arith.constant 0 : index
      %42 = vector.load %arg5[%c0_21, %c0_22] : memref<8x1xf32, #tpu.memory_space<vmem>>, vector<8x1xf32>
      %c0_23 = arith.constant 0 : index
      %c0_24 = arith.constant 0 : index
      %43 = vector.load %arg6[%c0_23, %c0_24] : memref<8x1xf32, #tpu.memory_space<vmem>>, vector<8x1xf32>
      %44 = math.log %43 : vector<8x1xf32>
      %45 = arith.addf %42, %44 : vector<8x1xf32>
      %c-100_i32 = arith.constant -100 : i32
      %46 = vector.broadcast %c-100_i32 : i32 to vector<8x1xi32>
      %47 = arith.cmpi ne, %3, %46 : vector<8x1xi32>
      %c0_25 = arith.constant 0 : index
      %c0_26 = arith.constant 0 : index
      %48 = vector.load %arg7[%c0_25, %c0_26] : memref<8x1xf32, #tpu.memory_space<vmem>>, vector<8x1xf32>
      %49 = arith.subf %45, %48 : vector<8x1xf32>
      %cst_27 = arith.constant 0.000000e+00 : f32
      %50 = vector.broadcast %cst_27 : f32 to vector<8x1xf32>
      %51 = arith.select %47, %49, %50 : vector<8x1xi1>, vector<8x1xf32>
      %52 = vector.shape_cast %51 : vector<8x1xf32> to vector<1x8x1xf32>
      %cst_28 = arith.constant dense<0.000000e+00> : vector<1xf32>
      %53 = vector.multi_reduction <add>, %52, %cst_28 [1, 2] : vector<1x8x1xf32> to vector<1xf32>
      %54 = vector.shape_cast %53 : vector<1xf32> to vector<1x1x1xf32>
      %55 = vector.extract %54[0, 0, 0] : f32 from vector<1x1x1xf32>
      %56 = tpu.iota {dimensions = array<i32: 1>} : vector<1x8x128xi32>
      %57 = tpu.iota {dimensions = array<i32: 2>} : vector<1x8x128xi32>
      %c0_i32_29 = arith.constant 0 : i32
      %58 = vector.broadcast %c0_i32_29 : i32 to vector<1x8x128xi32>
      %59 = arith.cmpi eq, %56, %58 : vector<1x8x128xi32>
      %c0_i32_30 = arith.constant 0 : i32
      %60 = vector.broadcast %c0_i32_30 : i32 to vector<1x8x128xi32>
      %61 = arith.cmpi eq, %57, %60 : vector<1x8x128xi32>
      %62 = arith.andi %59, %61 : vector<1x8x128xi1>
      %cst_31 = arith.constant 0.000000e+00 : f32
      %63 = vector.broadcast %55 : f32 to vector<1x8x128xf32>
      %64 = vector.broadcast %cst_31 : f32 to vector<1x8x128xf32>
      %65 = arith.select %62, %63, %64 : vector<1x8x128xi1>, vector<1x8x128xf32>
      %c0_32 = arith.constant 0 : index
      %c0_33 = arith.constant 0 : index
      %c0_34 = arith.constant 0 : index
      %66 = vector.load %arg4[%c0_32, %c0_33, %c0_34] : memref<1x8x128xf32, #tpu.memory_space<vmem>>, vector<1x8x128xf32>
      tpu.vector_store %arg4[%c0_32, %c0_33, %c0_34], %65 {strides = array<i32>} : memref<1x8x128xf32, #tpu.memory_space<vmem>>, vector<1x8x128xf32>,
    } else {
    }
    return
  }
  func.func @transform_0(%arg0: i32, %arg1: i32) -> (i32, i32) {
    %c0_i32 = arith.constant 0 : i32
    return %arg0, %arg1 : i32, i32
  }
  func.func @transform_1(%arg0: i32, %arg1: i32) -> (i32, i32) {
    %c0_i32 = arith.constant 0 : i32
    %c0_i32_0 = arith.constant 0 : i32
    return %arg0, %c0_i32 : i32, i32
  }
  func.func @transform_2(%arg0: i32, %arg1: i32) -> (i32, i32, i32) {
    %c0_i32 = arith.constant 0 : i32
    %c0_i32_0 = arith.constant 0 : i32
    %c0_i32_1 = arith.constant 0 : i32
    return %arg0, %c0_i32, %c0_i32_0 : i32, i32, i32
  }
}

</mosaic_0001>

<bundles_post_ra>
// kernel: chunked_ce_loss.8
= control target key start
LH: loop header
LB: loop body
LE: loop exit
PB: predicated region body
PF: predicated region fallthrough
CT: control target
= control target key end

     0   :  { %vm17_vm0 = vcmask 7168   ;;  %vm52_vm1 = vcmask 1043456   ;;  %v143_v1 = vmov -inf   ;;  %v144_v7 = vmov 0   ;;  %s177_s0 = inlined_call_operand.vmem [shape: bf16[8,256], index: 0, kind: input, shape index: {}]   ;;  %s178_s1 = inlined_call_operand.vmem [shape: s32[8,1], index: 1, kind: input, shape index: {}]   ;;  %s179_s2 = inlined_call_operand.vmem [shape: f32[1,8,128], index: 2, kind: output, shape index: {}]  }
   0x1   :  { %v28_v0 = vld [vmem:[%s177_s0] sm:$0xff]  ;;  %18 = vst.msk [vmem:[#allocation2] sm:$0xff] %vm17_vm0, %v143_v1  ;;  %131 = vset.pattern.permute.xlu0 %v144_v7  ;;  %132 = vset.pattern.permute.xlu1 %v144_v7  ;;  %v145_v9 = vmov 0.0   ;;  %v25_v15 = vlaneseq }
   0x2   :  { %v124_v2 = vcombine.low %v28_v0, %v28_v0  ;;  %v125_v3 = vcombine.high %v28_v0, %v28_v0  ;;  %v21_v8 = vld [vmem:[%s178_s1] sm:$0xff]  ;;  %19 = vst.msk [vmem:[#allocation3] sm:$0xff] %vm17_vm0, %v145_v9  ;;  %20 = vst.msk [vmem:[#allocation4] sm:$0xff] %vm17_vm0, %v145_v9  ;;  %v71_v16 = vunpack.c.l.bf16 %v28_v0  ;;  %v72_v17 = vunpack.c.h.bf16 %v28_v0 }
   0x3   :  { %30 = vperm.xlu1 %132, %v21_v8   ;;  %v26_v18 = vand.u32 127, %v25_v15  ;;  %vm98_vm5 = vcmp.ne.s32.totalorder %v21_v8, 4294967196  ;;  %v113_v60 = vshrl.u32 %v25_v15, 7 }
   0x4   :  { %v55_v4 = vsel %vm52_vm1, %v124_v2, 4286644096  ;;  %v58_v5 = vsel %vm52_vm1, %v125_v3, 4286644096 }
   0x5   :  { %v60_v6 = vmax.bf16 %v58_v5, %v55_v4  ;;  %v27_v22 = vadd.s32 128, %v26_v18  ;;  %vm114_vm6 = vcmp.eq.s32.totalorder %v113_v60, 0  ;;  %vm115_vm7 = vcmp.eq.s32.totalorder %v26_v18, 0 }
   0x6   :  { %vm116_vm8 = vmand %vm114_vm6, %vm115_vm7 }
   0x7   :  { %61 = vmax.xlane.bf16.xlu0 %v60_v6 }
   0x8   :  { %v64_v10 = vld [vmem:[#allocation2] sm:$0xff] }
   0x9   :  { %v66_v35 = vld [vmem:[#allocation3] sm:$0xff]  ;;  %v34_v41 = vld [vmem:[#allocation4] sm:$0xff] }
  0x82   :  { %v31_v25 = vpop.permute.xlu1 %30 }
  0x83   :  { %vm32_vm2 = vcmp.eq.s32.totalorder %v26_v18, %v31_v25  ;;  %vm33_vm3 = vcmp.eq.s32.totalorder %v27_v22, %v31_v25 }
  0x84   :  { %vm35_vm4 = vmpackc.low %vm33_vm3, %vm32_vm2 }
  0x85   :  { %v36_v26 = vsel %vm35_vm4, %v28_v0, 0 }
  0x86   :  { %v37_v28 = vunpack.c.l.bf16 %v36_v26  ;;  %v38_v29 = vunpack.c.h.bf16 %v36_v26 }
  0x88   :  { %v39_v32 = vadd.f32 %v38_v29, %v37_v28 }
  0x98   :  { %v62_v11 = vpop.xlane.xlu0 %61 }
  0x99   :  { %v63_v12 = vunpack.c.l.bf16 %v62_v11 }
  0x9b   :  { %v65_v13 = vmax.f32 %v64_v10, %v63_v12 }
  0x9d   :  { %v67_v14 = vsub.f32 %v64_v10, %v65_v13  ;;  %89 = vst.msk [vmem:[#allocation2] sm:$0xff] %vm17_vm0, %v65_v13  ;;  %75 = vperm.xlu0 %131, %v65_v13  }
  0x9f   :  { %v68_v33 = vmul.f32 1.442695, %v67_v14 }
  0xa4   :  { %v93_v47 = vld [vmem:[#allocation2] sm:$0xff] }
 0x11c   :  { %v76_v19 = vpop.permute.xlu0 %75 }
 0x11d   :  { %v78_v20 = vsub.f32 %v71_v16, %v76_v19  ;;  %v79_v21 = vsub.f32 %v72_v17, %v76_v19 }
 0x11f   :  { %v80_v23 = vmul.f32 1.442695, %v78_v20  ;;  %v82_v24 = vmul.f32 1.442695, %v79_v21 }
 0x121   :  { %135 = vpow2.f32 %v80_v23 }
 0x122   :  { %137 = vpow2.f32 %v82_v24 }
 0x123   :  { %139 = vpow2.f32 %v68_v33 }
 0x12b   :  { %v136_v27 = vpop.eup %135 }
 0x12c   :  { %v138_v30 = vpop.eup %137 }
 0x12d   :  { %v84_v31 = vadd.f32 %v138_v30, %v136_v27  ;;  %v140_v34 = vpop.eup %139 }
 0x12e   :  { %v70_v36 = vmul.f32 %v140_v34, %v66_v35 }
 0x12f   :  { %85 = vadd.xlane.f32.xlu1 %v84_v31 }
 0x133   :  { %40 = vadd.xlane.f32.xlu1 %v39_v32 }
 0x1bc   :  { %v86_v37 = vpop.xlane.xlu1 %85 }
 0x1bd   :  { %v87_v38 = vadd.f32 %v86_v37, %v70_v36 }
 0x1bf   :  { %88 = vst.msk [vmem:[#allocation3] sm:$0xff] %vm17_vm0, %v87_v38 }
 0x1c0   :  { %v41_v39 = vpop.xlane.xlu1 %40 }
 0x1c1   :  { %v42_v40 = vpack.c.bf16 %v41_v39, %v41_v39 }
 0x1c3   :  { %v43_v42 = vunpack.c.l.bf16 %v42_v40 }
 0x1c5   :  { %v44_v43 = vadd.f32 %v43_v42, %v34_v41 }
 0x1c6   :  { %v94_v44 = vld [vmem:[#allocation3] sm:$0xff] }
 0x1c7   :  { %46 = vst.msk [vmem:[#allocation4] sm:$0xff] %vm17_vm0, %v44_v43  ;;  %141 = vlog2.f32 %v94_v44 }
 0x1ce   :  { %v99_v48 = vld [vmem:[#allocation4] sm:$0xff] }
 0x1d1   :  { %v142_v45 = vpop.eup %141 }
 0x1d2   :  { %v96_v46 = vmul.f32 0.6931472, %v142_v45 }
 0x1d4   :  { %v97_v49 = vadd.f32 %v96_v46, %v93_v47 }
 0x1d6   :  { %v100_v50 = vsub.f32 %v97_v49, %v99_v48 }
 0x1d8   :  { %v101_v51 = vsel %vm98_vm5, %v100_v50, 0.0 }
 0x1d9   :  { %v102_v52 = vsel %vm17_vm0, %v101_v51, 0.0 }
 0x1da   :  { %103 = vadd.xlane.f32.xlu1 %v102_v52 }
 0x267   :  { %v104_v53 = vpop.xlane.xlu1 %103 }
 0x268   :  { %v105_v54 = vrot.slane %v104_v53, 4 }
 0x26a   :  { %v106_v55 = vadd.f32 %v105_v54, %v104_v53 }
 0x26c   :  { %v107_v56 = vrot.slane %v106_v55, 2 }
 0x26e   :  { %v108_v57 = vadd.f32 %v107_v56, %v106_v55 }
 0x270   :  { %v109_v58 = vrot.slane %v108_v57, 1 }
 0x272   :  { %v110_v59 = vadd.f32 %v109_v58, %v108_v57 }
 0x274   :  { %126 = vpush %v110_v59 }
 0x2a5   :  { %s127_s0 = spop %126 }
 0x2a6   :  { %v117_v61 = vstv %s127_s0 }
 0x2a7   :  { %v118_v62 = vsel %vm116_vm8, %v117_v61, 0.0 }
 0x2a8   :  { %119 = vst [vmem:[%s179_s2] sm:$0xff] %v118_v62 }

</bundles_post_ra>
